<compile_context>
chip_gen: v7x
topology: tpu7x:2x2x1
jax: 0.10.0
libtpu: 0.0.40
codegen_flags: <defaults>
</compile_context>

<pallas_src>
import math

import jax
import jax.numpy as jnp
from jax.experimental import pallas as pl
from jax.experimental.pallas import tpu as pltpu

LANES = 128
TILE_BYTES = 4 * 1024 * 1024          # ~4 MiB tiles; x4 (dbl-buffered in+out) = 16 MiB
VMEM_LIMIT = 32 * 1024 * 1024         # generation-safe scoped-VMEM budget


def _copy_kernel(src_ref, dst_ref):
    # Pure pass-through of one tile (forward returns params as-is).
    dst_ref[...] = src_ref[...]


def _row_tile(rows: int, row_bytes: int) -> int:
    """Row-tile: ~TILE_BYTES per tile, multiple of 8, and >=2 grid steps when
    possible so v7x megacore can shard the copy across both TensorCores."""
    if rows <= 8:
        return rows                                        # full-extent block (exempt)
    by_bytes = max(8, (TILE_BYTES // max(row_bytes, 1)) // 8 * 8)
    half = max(8, (((rows + 1) // 2) + 7) // 8 * 8)        # force >=2 steps for big rows
    return min(by_bytes, half)


def _tiled_copy(x: jax.Array) -> jax.Array:
    """Tiled, software-pipelined HBM->HBM identity copy of a 2-D array.

    No wrapper-side pad/concat/slice; partial trailing row-blocks are masked
    by Pallas automatically.
    """
    rows, cols = x.shape
    tm = _row_tile(rows, cols * jnp.dtype(x.dtype).itemsize)
    grid = (pl.cdiv(rows, tm),)
    return pl.pallas_call(
        _copy_kernel,
        out_shape=jax.ShapeDtypeStruct((rows, cols), x.dtype),
        grid=grid,
        in_specs=[pl.BlockSpec((tm, cols), lambda i: (i, 0))],
        out_specs=pl.BlockSpec((tm, cols), lambda i: (i, 0)),
        compiler_params=pltpu.CompilerParams(
            # Independent copy axis: enables megacore sharding on v7x
            # (no-op on single-TC v5e/v6e).
            dimension_semantics=("parallel",),
            vmem_limit_bytes=VMEM_LIMIT,
        ),
    )(x)


def _passthrough(emb: jax.Array) -> jax.Array:
    """Identity pass-through of one embedding table via a tiled Pallas copy."""
    n, d = emb.shape
    total = n * d
    if d % LANES != 0 and total % LANES == 0:
        # Free contiguous metadata reshape to a lane-dense [rows, 128] slab
        # (unmasked full-lane stores); no pad/concat, no post-kernel slice.
        out = _tiled_copy(emb.reshape(total // LANES, LANES))
        return out.reshape(n, d)
    # d is already lane-dense, or total isn't a multiple of 128: copy in the
    # native layout.  Full-extent last dim is exempt from the (8,128) rule;
    # narrow d costs masked stores but avoids any wrapper-side HBM copies.
    return _tiled_copy(emb)


@jax.jit
def _passthrough_pair(user_emb: jax.Array, item_emb: jax.Array):
    # Both copies under one jit so the two pallas_calls pipeline back-to-back.
    return _passthrough(user_emb), _passthrough(item_emb)


def xavier_uniform(key, shape, dtype=jnp.float32):
    """nn.init.xavier_uniform_ for a 2-D tensor: U(-a, a), a = sqrt(6/(fan_in+fan_out))."""
    fan_out, fan_in = shape[0], shape[1]
    bound = math.sqrt(6.0 / (fan_in + fan_out))
    return jax.random.uniform(key, shape, dtype=dtype, minval=-bound, maxval=bound)


class MatrixFactorization:
    """JAX/Pallas port of Matrix_Factorization."""

    def __init__(self, user_num: int, item_num: int, emb_size: int, key,
                 use_pallas_passthrough: bool = False):
        ku, ki = jax.random.split(key)
        self.user_emb = xavier_uniform(ku, (user_num, emb_size))
        self.item_emb = xavier_uniform(ki, (item_num, emb_size))
        self.use_pallas_passthrough = use_pallas_passthrough

    def forward(self, perturb=None, *, use_kernel=None):
        # `perturb` is unused, exactly as in the PyTorch module.
        del perturb
        use_kernel = self.use_pallas_passthrough if use_kernel is None else use_kernel
        if not use_kernel:
            # Production path: zero HBM traffic — return the parameters directly.
            # TODO(synk): forward contains no matmul/reduction; nothing more is
            # expressible as a kernel, so the Pallas copy is exercise-only.
            return self.user_emb, self.item_emb
        # Exercise path: identity pass-through via the Pallas copy kernel.
        return _passthrough_pair(self.user_emb, self.item_emb)


if __name__ == "__main__":
    key = jax.random.PRNGKey(0)

    user_num, item_num, emb_size = 8, 16, 32
    model = MatrixFactorization(user_num, item_num, emb_size, key)

    # Production (zero-copy) default path.
    u0, i0 = model.forward(perturb=None)

    # Kernel-exercise path (flag-gated): runs the Pallas copy once.
    u1, i1 = model.forward(perturb=None, use_kernel=True)
    jax.block_until_ready(u1)
    jax.block_until_ready(i1)

    # Also exercise the multi-step tiled grid path on a small lane-dense slab.
    probe = jax.random.normal(jax.random.PRNGKey(1), (16, 128), dtype=jnp.float32)
    probe_out = jax.block_until_ready(_tiled_copy(probe))

    # Semantics check: outputs must equal the embedding tables exactly.
    assert u0.shape == (user_num, emb_size) and i0.shape == (item_num, emb_size)
    assert u1.shape == (user_num, emb_size) and i1.shape == (item_num, emb_size)
    assert bool(jnp.array_equal(u0, model.user_emb))
    assert bool(jnp.array_equal(i0, model.item_emb))
    assert bool(jnp.array_equal(u1, model.user_emb))
    assert bool(jnp.array_equal(i1, model.item_emb))
    assert bool(jnp.array_equal(probe_out, probe))

    print("KERNEL_OK")
</pallas_src>

<mosaic_0001>
module attributes {stable_mosaic.version = 11 : i64} {
  func.func @_copy_kernel(%arg0: i32, %arg1: memref<4x128xf32, #tpu.memory_space<vmem>>, %arg2: memref<4x128xf32, #tpu.memory_space<vmem>>) attributes {dimension_semantics = [#tpu.dimension_semantics<parallel>], iteration_bounds = array<i64: 1>, scalar_prefetch = 0 : i64, scratch_operands = 0 : i64, tpu.core_type = #tpu.core_type<tc>, window_params = [{transform_indices = @transform_0, window_bounds = array<i64: 4, 128>}, {transform_indices = @transform_1, window_bounds = array<i64: 4, 128>}]} {
    %c0 = arith.constant 0 : index
    %c0_0 = arith.constant 0 : index
    %0 = vector.load %arg1[%c0, %c0_0] : memref<4x128xf32, #tpu.memory_space<vmem>>, vector<4x128xf32>
    %c0_1 = arith.constant 0 : index
    %c0_2 = arith.constant 0 : index
    %1 = vector.load %arg2[%c0_1, %c0_2] : memref<4x128xf32, #tpu.memory_space<vmem>>, vector<4x128xf32>
    tpu.vector_store %arg2[%c0_1, %c0_2], %0 {strides = array<i32>} : memref<4x128xf32, #tpu.memory_space<vmem>>, vector<4x128xf32>,
    return
  }
  func.func @transform_0(%arg0: i32) -> (i32, i32) {
    %c0_i32 = arith.constant 0 : i32
    %c0_i32_0 = arith.constant 0 : i32
    return %arg0, %c0_i32 : i32, i32
  }
  func.func @transform_1(%arg0: i32) -> (i32, i32) {
    %c0_i32 = arith.constant 0 : i32
    %c0_i32_0 = arith.constant 0 : i32
    return %arg0, %c0_i32 : i32, i32
  }
}

module attributes {stable_mosaic.version = 11 : i64} {
  func.func @_copy_kernel(%arg0: i32, %arg1: memref<2x128xf32, #tpu.memory_space<vmem>>, %arg2: memref<2x128xf32, #tpu.memory_space<vmem>>) attributes {dimension_semantics = [#tpu.dimension_semantics<parallel>], iteration_bounds = array<i64: 1>, scalar_prefetch = 0 : i64, scratch_operands = 0 : i64, tpu.core_type = #tpu.core_type<tc>, window_params = [{transform_indices = @transform_0, window_bounds = array<i64: 2, 128>}, {transform_indices = @transform_1, window_bounds = array<i64: 2, 128>}]} {
    %c0 = arith.constant 0 : index
    %c0_0 = arith.constant 0 : index
    %0 = vector.load %arg1[%c0, %c0_0] : memref<2x128xf32, #tpu.memory_space<vmem>>, vector<2x128xf32>
    %c0_1 = arith.constant 0 : index
    %c0_2 = arith.constant 0 : index
    %1 = vector.load %arg2[%c0_1, %c0_2] : memref<2x128xf32, #tpu.memory_space<vmem>>, vector<2x128xf32>
    tpu.vector_store %arg2[%c0_1, %c0_2], %0 {strides = array<i32>} : memref<2x128xf32, #tpu.memory_space<vmem>>, vector<2x128xf32>,
    return
  }
  func.func @transform_0(%arg0: i32) -> (i32, i32) {
    %c0_i32 = arith.constant 0 : i32
    %c0_i32_0 = arith.constant 0 : i32
    return %arg0, %c0_i32 : i32, i32
  }
  func.func @transform_1(%arg0: i32) -> (i32, i32) {
    %c0_i32 = arith.constant 0 : i32
    %c0_i32_0 = arith.constant 0 : i32
    return %arg0, %c0_i32 : i32, i32
  }
}

</mosaic_0001>

<bundles_post_ra>
// kernel: _passthrough_pair.3
= control target key start
LH: loop header
LB: loop body
LE: loop exit
PB: predicated region body
PF: predicated region fallthrough
CT: control target
= control target key end

     0   :  { %s30_s0 = inlined_call_operand.vmem [shape: f32[4,128], index: 0, kind: input, shape index: {}]   ;;  %s31_s1 = inlined_call_operand.vmem [shape: f32[4,128], index: 1, kind: output, shape index: {}]  }
   0x1   :  { %v8_v0 = vld [vmem:[%s30_s0] sm:$0xf] }
   0x2   :  { %9 = vst [vmem:[%s31_s1] sm:$0xf] %v8_v0 }

// kernel: _passthrough_pair.2
= control target key start
LH: loop header
LB: loop body
LE: loop exit
PB: predicated region body
PF: predicated region fallthrough
CT: control target
= control target key end

     0   :  { %s30_s0 = inlined_call_operand.vmem [shape: f32[2,128], index: 0, kind: input, shape index: {}]   ;;  %s31_s1 = inlined_call_operand.vmem [shape: f32[2,128], index: 1, kind: output, shape index: {}]  }
   0x1   :  { %v8_v0 = vld [vmem:[%s30_s0] sm:$0x3] }
   0x2   :  { %9 = vst [vmem:[%s31_s1] sm:$0x3] %v8_v0 }

</bundles_post_ra>
